<compile_context>
chip_gen: v5e
topology: v5e:2x2
jax: 0.10.0
libtpu: 0.0.40
codegen_flags: <defaults>
</compile_context>

<pallas_src>
import jax
import jax.numpy as jnp
import numpy as np
from jax import lax
from jax.experimental import pallas as pl
from jax.experimental.pallas import tpu as pltpu

# Above this sequence length the recurrence switches from a fully-unrolled static
# loop to a partially-unrolled fori_loop (bounds compile time / register pressure).
_UNROLL_LIMIT = 32


def stock_encoder_kernel(x_ref, wih_ref, whh_ref, b_ref, fcw_ref, fcb_ref, out_ref):
    # x_ref:   (B, T)    raw (batch, time) inputs, f32
    # wih_ref: (1, 4H)   input->gates weights (input_size == 1), f32
    # whh_ref: (H, 4H)   hidden->gates weights (pre-transposed), bf16 MXU operand
    # b_ref:   (1, 4H)   bias_ih + bias_hh, f32
    # fcw_ref: (H, Hh)   fc weight (pre-transposed), bf16 MXU operand
    # fcb_ref: (1, Hh)   fc bias, f32
    # out_ref: (B, Hh)   f32
    B, T = x_ref.shape
    H = whh_ref.shape[0]
    G = 4 * H

    wih = wih_ref[...]
    whh = whh_ref[...]          # bf16, resident in VMEM across all timesteps
    b = b_ref[...]
    x_cols = x_ref[...]         # (B, T), single tile

    # Hoisted single-tanh gate-activation constants (one vreg each at 4H=128):
    #   i/f/o lanes: sigmoid(x) = 0.5 * tanh(0.5 * x) + 0.5
    #   g lanes    : tanh(x)    = 1.0 * tanh(1.0 * x) + 0.0
    lane = lax.broadcasted_iota(jnp.int32, (B, G), 1)
    is_g = jnp.logical_and(lane >= 2 * H, lane < 3 * H)
    scale = jnp.where(is_g, 1.0, 0.5).astype(jnp.float32)     # pre- AND post-mul
    post_add = jnp.where(is_g, 0.0, 0.5).astype(jnp.float32)

    def step(h_bf16, c, x_t):
        # Input projection per step (independent of the recurrent state, so it is
        # off the serial chain and overlaps the previous step's MXU work).
        pre_t = x_t * wih + b                                   # (B, 4H) f32
        gates = pre_t + jnp.dot(h_bf16, whh,
                                preferred_element_type=jnp.float32)
        # ONE full-width EUP tanh pass (instead of tanh + sigmoid passes).
        act = jnp.tanh(gates * scale) * scale + post_add
        i_g = act[:, 0 * H:1 * H]
        f_g = act[:, 1 * H:2 * H]
        g_g = act[:, 2 * H:3 * H]
        o_g = act[:, 3 * H:4 * H]
        c_new = f_g * c + i_g * g_g
        # h only ever feeds the MXU -> produce it directly in bf16 (c stays f32).
        h_new = (o_g * jnp.tanh(c_new)).astype(jnp.bfloat16)
        return h_new, c_new

    h = jnp.zeros((B, H), jnp.bfloat16)
    c = jnp.zeros((B, H), jnp.float32)

    if T <= _UNROLL_LIMIT:
        # Small static T: fully unrolled straight-line recurrence, static slices.
        for t in range(T):
            h, c = step(h, c, x_cols[:, t:t + 1])
    else:
        # Long sequences: partially-unrolled fori_loop keeps LLO visibility while
        # bounding vreg live ranges and compile time.
        def body(t, carry):
            h_, c_ = carry
            x_t = lax.dynamic_slice(x_cols, (0, t), (B, 1))
            return step(h_, c_, x_t)
        h, c = lax.fori_loop(0, T, body, (h, c), unroll=4)

    # fc: (B, H) @ (H, Hh) + bias   (bf16 operands, f32 accumulation)
    y = jnp.dot(h, fcw_ref[...], preferred_element_type=jnp.float32) + fcb_ref[...]

    # InstanceNorm1d on (B, 1, Hh): per-row normalization over the Hh features.
    mu = jnp.mean(y, axis=-1, keepdims=True)
    var = jnp.mean((y - mu) ** 2, axis=-1, keepdims=True)
    out_ref[...] = jnp.tanh((y - mu) * lax.rsqrt(var + 1e-5))


def init_params(key, input_size, hidden_size):
    """Deterministic init matching PyTorch default shapes (uniform +-1/sqrt(H))."""
    H = hidden_size
    Hh = H // 2
    ks = jax.random.split(key, 6)
    s = 1.0 / float(np.sqrt(H))
    w_ih = jax.random.uniform(ks[0], (4 * H, input_size), jnp.float32, -s, s)
    w_hh = jax.random.uniform(ks[1], (4 * H, H), jnp.float32, -s, s)
    b_ih = jax.random.uniform(ks[2], (4 * H,), jnp.float32, -s, s)
    b_hh = jax.random.uniform(ks[3], (4 * H,), jnp.float32, -s, s)
    fc_w = jax.random.uniform(ks[4], (Hh, H), jnp.float32, -s, s)
    fc_b = jax.random.uniform(ks[5], (Hh,), jnp.float32, -s, s)
    return (w_ih, w_hh, b_ih, b_hh, fc_w, fc_b)


def preprocess_params(params):
    """One-time parameter prep: transposes, bias combine, bf16 cast of MXU operands."""
    w_ih, w_hh, b_ih, b_hh, fc_w, fc_b = params
    H = w_hh.shape[1]
    Hh = fc_w.shape[0]
    wih = jnp.transpose(w_ih).reshape(1, 4 * H).astype(jnp.float32)   # (1, 4H)
    whh = jnp.transpose(w_hh).astype(jnp.bfloat16)                    # (H, 4H) bf16
    b = (b_ih + b_hh).reshape(1, 4 * H).astype(jnp.float32)           # (1, 4H)
    fcw = jnp.transpose(fc_w).astype(jnp.bfloat16)                    # (H, Hh) bf16
    fcb = fc_b.reshape(1, Hh).astype(jnp.float32)                     # (1, Hh)
    return wih, whh, b, fcw, fcb


def _default_batch_block(B, mxu_rows):
    """Block heuristic: >=2 grid steps for stacked batches (v7x dual-TC sharding),
    rows a multiple of 8, capped at the MXU height (256 v6e/v7x, 128 v5e)."""
    if B <= 8:
        return B
    half = ((B + 1) // 2 + 7) // 8 * 8
    return min(mxu_rows, half)


def stock_encoder_forward(x, prep, *, batch_block=None, mxu_rows=256):
    """x: (1, B, T) -- mirrors the PyTorch forward's leading squeeze(0).
    Pass mxu_rows=128 on v5e (128x128 MXU); 256 (default) on v6e/v7x."""
    wih, whh, b, fcw, fcb = prep
    H = whh.shape[0]
    Hh = fcw.shape[1]
    xs = jnp.squeeze(x, axis=0).astype(jnp.float32)   # (B, T)
    B, T = xs.shape

    if batch_block is None:
        batch_block = _default_batch_block(B, mxu_rows)
    grid = (pl.cdiv(B, batch_block),)

    return pl.pallas_call(
        stock_encoder_kernel,
        out_shape=jax.ShapeDtypeStruct((B, Hh), jnp.float32),
        grid=grid,
        in_specs=[
            pl.BlockSpec((batch_block, T), lambda i: (i, 0)),
            pl.BlockSpec((1, 4 * H), lambda i: (0, 0)),
            pl.BlockSpec((H, 4 * H), lambda i: (0, 0)),
            pl.BlockSpec((1, 4 * H), lambda i: (0, 0)),
            pl.BlockSpec((H, Hh), lambda i: (0, 0)),
            pl.BlockSpec((1, Hh), lambda i: (0, 0)),
        ],
        out_specs=pl.BlockSpec((batch_block, Hh), lambda i: (i, 0)),
        compiler_params=pltpu.CompilerParams(
            dimension_semantics=("parallel",)),
    )(xs, wih, whh, b, fcw, fcb)


def reference_forward_mixed(x, prep):
    """Pure-JAX reference mirroring the kernel's matmul precision (bf16 MXU
    operands, f32 accumulation, f32 cell state) with standard gate activations."""
    wih, whh, b, fcw, fcb = prep
    H = whh.shape[0]
    xs = jnp.squeeze(x, axis=0).astype(jnp.float32)     # (B, T)
    B, T = xs.shape
    pre = jnp.transpose(xs)[:, :, None] * wih + b       # (T, B, 4H)

    def cell(carry, p_t):
        h, c = carry
        gates = p_t + jnp.dot(h.astype(jnp.bfloat16), whh,
                              preferred_element_type=jnp.float32)
        i, f, g, o = jnp.split(gates, 4, axis=-1)        # PyTorch gate order i,f,g,o
        i = jax.nn.sigmoid(i)
        f = jax.nn.sigmoid(f)
        g = jnp.tanh(g)
        o = jax.nn.sigmoid(o)
        c = f * c + i * g
        h = o * jnp.tanh(c)
        return (h, c), None

    h0 = jnp.zeros((B, H), jnp.float32)
    (h, _), _ = lax.scan(cell, (h0, h0), pre)
    y = jnp.dot(h.astype(jnp.bfloat16), fcw, preferred_element_type=jnp.float32) + fcb
    mu = y.mean(-1, keepdims=True)
    var = ((y - mu) ** 2).mean(-1, keepdims=True)
    return jnp.tanh((y - mu) * lax.rsqrt(var + 1e-5))


def reference_forward_f32(x, params):
    """True f32 reference (matches the original PyTorch module's numerics)."""
    w_ih, w_hh, b_ih, b_hh, fc_w, fc_b = params
    H = w_hh.shape[1]
    xs = jnp.squeeze(x, axis=0).astype(jnp.float32)      # (B, T)
    B, T = xs.shape
    x_tm = jnp.transpose(xs)[:, :, None]                 # (T, B, 1)

    def cell(carry, x_t):
        h, c = carry
        gates = x_t @ w_ih.T + h @ w_hh.T + b_ih + b_hh
        i, f, g, o = jnp.split(gates, 4, axis=-1)
        i = jax.nn.sigmoid(i)
        f = jax.nn.sigmoid(f)
        g = jnp.tanh(g)
        o = jax.nn.sigmoid(o)
        c = f * c + i * g
        h = o * jnp.tanh(c)
        return (h, c), None

    h0 = jnp.zeros((B, H), jnp.float32)
    (h, _), _ = lax.scan(cell, (h0, h0), x_tm)
    y = h @ fc_w.T + fc_b
    mu = y.mean(-1, keepdims=True)
    var = ((y - mu) ** 2).mean(-1, keepdims=True)
    return jnp.tanh((y - mu) * lax.rsqrt(var + 1e-5))


if __name__ == "__main__":
    INPUT_SIZE = 1     # forward's unsqueeze(-1) implies 1 feature per timestep
    HIDDEN = 32
    B, T = 8, 12

    key = jax.random.PRNGKey(0)
    k_x, k_p = jax.random.split(key)
    x = jax.random.normal(k_x, (1, B, T), dtype=jnp.float32)
    params = init_params(k_p, INPUT_SIZE, HIDDEN)
    prep = preprocess_params(params)   # one-time parameter preprocessing

    out = jax.block_until_ready(stock_encoder_forward(x, prep))
    ref_mixed = jax.block_until_ready(reference_forward_mixed(x, prep))
    ref_f32 = jax.block_until_ready(reference_forward_f32(x, params))

    # Tight check against the same mixed-precision math the kernel uses.
    np.testing.assert_allclose(np.asarray(out), np.asarray(ref_mixed),
                               rtol=2e-3, atol=2e-3)
    # Loose sanity check against true-f32 PyTorch-equivalent numerics.
    np.testing.assert_allclose(np.asarray(out), np.asarray(ref_f32),
                               rtol=5e-2, atol=5e-2)
    assert out.shape == (B, HIDDEN // 2)

    print("KERNEL_OK")
</pallas_src>

<mosaic_0001>
module attributes {stable_mosaic.version = 11 : i64} {
  func.func @stock_encoder_kernel(%arg0: i32, %arg1: memref<8x12xf32, #tpu.memory_space<vmem>>, %arg2: memref<1x128xf32, #tpu.memory_space<vmem>>, %arg3: memref<32x128xbf16, #tpu.memory_space<vmem>>, %arg4: memref<1x128xf32, #tpu.memory_space<vmem>>, %arg5: memref<32x16xbf16, #tpu.memory_space<vmem>>, %arg6: memref<1x16xf32, #tpu.memory_space<vmem>>, %arg7: memref<8x16xf32, #tpu.memory_space<vmem>>) attributes {dimension_semantics = [#tpu.dimension_semantics<parallel>], iteration_bounds = array<i64: 1>, scalar_prefetch = 0 : i64, scratch_operands = 0 : i64, tpu.core_type = #tpu.core_type<tc>, window_params = [{transform_indices = @transform_0, window_bounds = array<i64: 8, 12>}, {pipeline_mode = #tpu.pipeline_mode<synchronous>, transform_indices = @transform_1, window_bounds = array<i64: 1, 128>}, {pipeline_mode = #tpu.pipeline_mode<synchronous>, transform_indices = @transform_2, window_bounds = array<i64: 32, 128>}, {pipeline_mode = #tpu.pipeline_mode<synchronous>, transform_indices = @transform_3, window_bounds = array<i64: 1, 128>}, {pipeline_mode = #tpu.pipeline_mode<synchronous>, transform_indices = @transform_4, window_bounds = array<i64: 32, 16>}, {pipeline_mode = #tpu.pipeline_mode<synchronous>, transform_indices = @transform_5, window_bounds = array<i64: 1, 16>}, {transform_indices = @transform_6, window_bounds = array<i64: 8, 16>}]} {
    %c0 = arith.constant 0 : index
    %c0_0 = arith.constant 0 : index
    %0 = vector.load %arg2[%c0, %c0_0] : memref<1x128xf32, #tpu.memory_space<vmem>>, vector<1x128xf32>
    %c0_1 = arith.constant 0 : index
    %c0_2 = arith.constant 0 : index
    %1 = vector.load %arg3[%c0_1, %c0_2] : memref<32x128xbf16, #tpu.memory_space<vmem>>, vector<32x128xbf16>
    %c0_3 = arith.constant 0 : index
    %c0_4 = arith.constant 0 : index
    %2 = vector.load %arg4[%c0_3, %c0_4] : memref<1x128xf32, #tpu.memory_space<vmem>>, vector<1x128xf32>
    %c0_5 = arith.constant 0 : index
    %c0_6 = arith.constant 0 : index
    %3 = vector.load %arg1[%c0_5, %c0_6] : memref<8x12xf32, #tpu.memory_space<vmem>>, vector<8x12xf32>
    %4 = tpu.iota {dimensions = array<i32: 1>} : vector<8x128xi32>
    %c64_i32 = arith.constant 64 : i32
    %5 = vector.broadcast %c64_i32 : i32 to vector<8x128xi32>
    %6 = arith.cmpi sge, %4, %5 : vector<8x128xi32>
    %c96_i32 = arith.constant 96 : i32
    %7 = vector.broadcast %c96_i32 : i32 to vector<8x128xi32>
    %8 = arith.cmpi slt, %4, %7 : vector<8x128xi32>
    %9 = arith.andi %6, %8 : vector<8x128xi1>
    %cst = arith.constant 1.000000e+00 : f32
    %cst_7 = arith.constant 5.000000e-01 : f32
    %10 = vector.broadcast %cst : f32 to vector<8x128xf32>
    %11 = vector.broadcast %cst_7 : f32 to vector<8x128xf32>
    %12 = arith.select %9, %10, %11 : vector<8x128xi1>, vector<8x128xf32>
    %cst_8 = arith.constant 0.000000e+00 : f32
    %cst_9 = arith.constant 5.000000e-01 : f32
    %13 = vector.broadcast %cst_8 : f32 to vector<8x128xf32>
    %14 = vector.broadcast %cst_9 : f32 to vector<8x128xf32>
    %15 = arith.select %9, %13, %14 : vector<8x128xi1>, vector<8x128xf32>
    %cst_10 = arith.constant 0.000000e+00 : bf16
    %16 = vector.broadcast %cst_10 : bf16 to vector<8x32xbf16>
    %cst_11 = arith.constant 0.000000e+00 : f32
    %17 = vector.broadcast %cst_11 : f32 to vector<8x32xf32>
    %18 = vector.extract_strided_slice %3 {offsets = [0, 0], sizes = [8, 1], strides = [1, 1]} : vector<8x12xf32> to vector<8x1xf32>
    %19 = vector.broadcast %18 : vector<8x1xf32> to vector<8x128xf32>
    %20 = vector.broadcast %0 : vector<1x128xf32> to vector<8x128xf32>
    %21 = arith.mulf %19, %20 : vector<8x128xf32>
    %22 = vector.broadcast %2 : vector<1x128xf32> to vector<8x128xf32>
    %23 = arith.addf %21, %22 : vector<8x128xf32>
    %cst_12 = arith.constant dense<0.000000e+00> : vector<8x128xf32>
    %24 = tpu.matmul %16, %1, %cst_12 {dimension_numbers = #tpu.dot_dimension_numbers<[1], [0], [0], [1], [0, 0, 1, 1], [], []>} : vector<8x32xbf16>, vector<32x128xbf16>, vector<8x128xf32> -> vector<8x128xf32>
    %25 = arith.addf %23, %24 : vector<8x128xf32>
    %26 = arith.mulf %25, %12 : vector<8x128xf32>
    %27 = math.tanh %26 : vector<8x128xf32>
    %28 = arith.mulf %27, %12 : vector<8x128xf32>
    %29 = arith.addf %28, %15 : vector<8x128xf32>
    %30 = vector.extract_strided_slice %29 {offsets = [0, 0], sizes = [8, 32], strides = [1, 1]} : vector<8x128xf32> to vector<8x32xf32>
    %31 = vector.extract_strided_slice %29 {offsets = [0, 32], sizes = [8, 32], strides = [1, 1]} : vector<8x128xf32> to vector<8x32xf32>
    %32 = vector.extract_strided_slice %29 {offsets = [0, 64], sizes = [8, 32], strides = [1, 1]} : vector<8x128xf32> to vector<8x32xf32>
    %33 = vector.extract_strided_slice %29 {offsets = [0, 96], sizes = [8, 32], strides = [1, 1]} : vector<8x128xf32> to vector<8x32xf32>
    %34 = arith.mulf %31, %17 : vector<8x32xf32>
    %35 = arith.mulf %30, %32 : vector<8x32xf32>
    %36 = arith.addf %34, %35 : vector<8x32xf32>
    %37 = math.tanh %36 : vector<8x32xf32>
    %38 = arith.mulf %33, %37 : vector<8x32xf32>
    %39 = arith.truncf %38 : vector<8x32xf32> to vector<8x32xbf16>
    %40 = vector.extract_strided_slice %3 {offsets = [0, 1], sizes = [8, 1], strides = [1, 1]} : vector<8x12xf32> to vector<8x1xf32>
    %41 = vector.broadcast %40 : vector<8x1xf32> to vector<8x128xf32>
    %42 = vector.broadcast %0 : vector<1x128xf32> to vector<8x128xf32>
    %43 = arith.mulf %41, %42 : vector<8x128xf32>
    %44 = vector.broadcast %2 : vector<1x128xf32> to vector<8x128xf32>
    %45 = arith.addf %43, %44 : vector<8x128xf32>
    %cst_13 = arith.constant dense<0.000000e+00> : vector<8x128xf32>
    %46 = tpu.matmul %39, %1, %cst_13 {dimension_numbers = #tpu.dot_dimension_numbers<[1], [0], [0], [1], [0, 0, 1, 1], [], []>} : vector<8x32xbf16>, vector<32x128xbf16>, vector<8x128xf32> -> vector<8x128xf32>
    %47 = arith.addf %45, %46 : vector<8x128xf32>
    %48 = arith.mulf %47, %12 : vector<8x128xf32>
    %49 = math.tanh %48 : vector<8x128xf32>
    %50 = arith.mulf %49, %12 : vector<8x128xf32>
    %51 = arith.addf %50, %15 : vector<8x128xf32>
    %52 = vector.extract_strided_slice %51 {offsets = [0, 0], sizes = [8, 32], strides = [1, 1]} : vector<8x128xf32> to vector<8x32xf32>
    %53 = vector.extract_strided_slice %51 {offsets = [0, 32], sizes = [8, 32], strides = [1, 1]} : vector<8x128xf32> to vector<8x32xf32>
    %54 = vector.extract_strided_slice %51 {offsets = [0, 64], sizes = [8, 32], strides = [1, 1]} : vector<8x128xf32> to vector<8x32xf32>
    %55 = vector.extract_strided_slice %51 {offsets = [0, 96], sizes = [8, 32], strides = [1, 1]} : vector<8x128xf32> to vector<8x32xf32>
    %56 = arith.mulf %53, %36 : vector<8x32xf32>
    %57 = arith.mulf %52, %54 : vector<8x32xf32>
    %58 = arith.addf %56, %57 : vector<8x32xf32>
    %59 = math.tanh %58 : vector<8x32xf32>
    %60 = arith.mulf %55, %59 : vector<8x32xf32>
    %61 = arith.truncf %60 : vector<8x32xf32> to vector<8x32xbf16>
    %62 = vector.extract_strided_slice %3 {offsets = [0, 2], sizes = [8, 1], strides = [1, 1]} : vector<8x12xf32> to vector<8x1xf32>
    %63 = vector.broadcast %62 : vector<8x1xf32> to vector<8x128xf32>
    %64 = vector.broadcast %0 : vector<1x128xf32> to vector<8x128xf32>
    %65 = arith.mulf %63, %64 : vector<8x128xf32>
    %66 = vector.broadcast %2 : vector<1x128xf32> to vector<8x128xf32>
    %67 = arith.addf %65, %66 : vector<8x128xf32>
    %cst_14 = arith.constant dense<0.000000e+00> : vector<8x128xf32>
    %68 = tpu.matmul %61, %1, %cst_14 {dimension_numbers = #tpu.dot_dimension_numbers<[1], [0], [0], [1], [0, 0, 1, 1], [], []>} : vector<8x32xbf16>, vector<32x128xbf16>, vector<8x128xf32> -> vector<8x128xf32>
    %69 = arith.addf %67, %68 : vector<8x128xf32>
    %70 = arith.mulf %69, %12 : vector<8x128xf32>
    %71 = math.tanh %70 : vector<8x128xf32>
    %72 = arith.mulf %71, %12 : vector<8x128xf32>
    %73 = arith.addf %72, %15 : vector<8x128xf32>
    %74 = vector.extract_strided_slice %73 {offsets = [0, 0], sizes = [8, 32], strides = [1, 1]} : vector<8x128xf32> to vector<8x32xf32>
    %75 = vector.extract_strided_slice %73 {offsets = [0, 32], sizes = [8, 32], strides = [1, 1]} : vector<8x128xf32> to vector<8x32xf32>
    %76 = vector.extract_strided_slice %73 {offsets = [0, 64], sizes = [8, 32], strides = [1, 1]} : vector<8x128xf32> to vector<8x32xf32>
    %77 = vector.extract_strided_slice %73 {offsets = [0, 96], sizes = [8, 32], strides = [1, 1]} : vector<8x128xf32> to vector<8x32xf32>
    %78 = arith.mulf %75, %58 : vector<8x32xf32>
    %79 = arith.mulf %74, %76 : vector<8x32xf32>
    %80 = arith.addf %78, %79 : vector<8x32xf32>
    %81 = math.tanh %80 : vector<8x32xf32>
    %82 = arith.mulf %77, %81 : vector<8x32xf32>
    %83 = arith.truncf %82 : vector<8x32xf32> to vector<8x32xbf16>
    %84 = vector.extract_strided_slice %3 {offsets = [0, 3], sizes = [8, 1], strides = [1, 1]} : vector<8x12xf32> to vector<8x1xf32>
    %85 = vector.broadcast %84 : vector<8x1xf32> to vector<8x128xf32>
    %86 = vector.broadcast %0 : vector<1x128xf32> to vector<8x128xf32>
    %87 = arith.mulf %85, %86 : vector<8x128xf32>
    %88 = vector.broadcast %2 : vector<1x128xf32> to vector<8x128xf32>
    %89 = arith.addf %87, %88 : vector<8x128xf32>
    %cst_15 = arith.constant dense<0.000000e+00> : vector<8x128xf32>
    %90 = tpu.matmul %83, %1, %cst_15 {dimension_numbers = #tpu.dot_dimension_numbers<[1], [0], [0], [1], [0, 0, 1, 1], [], []>} : vector<8x32xbf16>, vector<32x128xbf16>, vector<8x128xf32> -> vector<8x128xf32>
    %91 = arith.addf %89, %90 : vector<8x128xf32>
    %92 = arith.mulf %91, %12 : vector<8x128xf32>
    %93 = math.tanh %92 : vector<8x128xf32>
    %94 = arith.mulf %93, %12 : vector<8x128xf32>
    %95 = arith.addf %94, %15 : vector<8x128xf32>
    %96 = vector.extract_strided_slice %95 {offsets = [0, 0], sizes = [8, 32], strides = [1, 1]} : vector<8x128xf32> to vector<8x32xf32>
    %97 = vector.extract_strided_slice %95 {offsets = [0, 32], sizes = [8, 32], strides = [1, 1]} : vector<8x128xf32> to vector<8x32xf32>
    %98 = vector.extract_strided_slice %95 {offsets = [0, 64], sizes = [8, 32], strides = [1, 1]} : vector<8x128xf32> to vector<8x32xf32>
    %99 = vector.extract_strided_slice %95 {offsets = [0, 96], sizes = [8, 32], strides = [1, 1]} : vector<8x128xf32> to vector<8x32xf32>
    %100 = arith.mulf %97, %80 : vector<8x32xf32>
    %101 = arith.mulf %96, %98 : vector<8x32xf32>
    %102 = arith.addf %100, %101 : vector<8x32xf32>
    %103 = math.tanh %102 : vector<8x32xf32>
    %104 = arith.mulf %99, %103 : vector<8x32xf32>
    %105 = arith.truncf %104 : vector<8x32xf32> to vector<8x32xbf16>
    %106 = vector.extract_strided_slice %3 {offsets = [0, 4], sizes = [8, 1], strides = [1, 1]} : vector<8x12xf32> to vector<8x1xf32>
    %107 = vector.broadcast %106 : vector<8x1xf32> to vector<8x128xf32>
    %108 = vector.broadcast %0 : vector<1x128xf32> to vector<8x128xf32>
    %109 = arith.mulf %107, %108 : vector<8x128xf32>
    %110 = vector.broadcast %2 : vector<1x128xf32> to vector<8x128xf32>
    %111 = arith.addf %109, %110 : vector<8x128xf32>
    %cst_16 = arith.constant dense<0.000000e+00> : vector<8x128xf32>
    %112 = tpu.matmul %105, %1, %cst_16 {dimension_numbers = #tpu.dot_dimension_numbers<[1], [0], [0], [1], [0, 0, 1, 1], [], []>} : vector<8x32xbf16>, vector<32x128xbf16>, vector<8x128xf32> -> vector<8x128xf32>
    %113 = arith.addf %111, %112 : vector<8x128xf32>
    %114 = arith.mulf %113, %12 : vector<8x128xf32>
    %115 = math.tanh %114 : vector<8x128xf32>
    %116 = arith.mulf %115, %12 : vector<8x128xf32>
    %117 = arith.addf %116, %15 : vector<8x128xf32>
    %118 = vector.extract_strided_slice %117 {offsets = [0, 0], sizes = [8, 32], strides = [1, 1]} : vector<8x128xf32> to vector<8x32xf32>
    %119 = vector.extract_strided_slice %117 {offsets = [0, 32], sizes = [8, 32], strides = [1, 1]} : vector<8x128xf32> to vector<8x32xf32>
    %120 = vector.extract_strided_slice %117 {offsets = [0, 64], sizes = [8, 32], strides = [1, 1]} : vector<8x128xf32> to vector<8x32xf32>
    %121 = vector.extract_strided_slice %117 {offsets = [0, 96], sizes = [8, 32], strides = [1, 1]} : vector<8x128xf32> to vector<8x32xf32>
    %122 = arith.mulf %119, %102 : vector<8x32xf32>
    %123 = arith.mulf %118, %120 : vector<8x32xf32>
    %124 = arith.addf %122, %123 : vector<8x32xf32>
    %125 = math.tanh %124 : vector<8x32xf32>
    %126 = arith.mulf %121, %125 : vector<8x32xf32>
    %127 = arith.truncf %126 : vector<8x32xf32> to vector<8x32xbf16>
    %128 = vector.extract_strided_slice %3 {offsets = [0, 5], sizes = [8, 1], strides = [1, 1]} : vector<8x12xf32> to vector<8x1xf32>
    %129 = vector.broadcast %128 : vector<8x1xf32> to vector<8x128xf32>
    %130 = vector.broadcast %0 : vector<1x128xf32> to vector<8x128xf32>
    %131 = arith.mulf %129, %130 : vector<8x128xf32>
    %132 = vector.broadcast %2 : vector<1x128xf32> to vector<8x128xf32>
    %133 = arith.addf %131, %132 : vector<8x128xf32>
    %cst_17 = arith.constant dense<0.000000e+00> : vector<8x128xf32>
    %134 = tpu.matmul %127, %1, %cst_17 {dimension_numbers = #tpu.dot_dimension_numbers<[1], [0], [0], [1], [0, 0, 1, 1], [], []>} : vector<8x32xbf16>, vector<32x128xbf16>, vector<8x128xf32> -> vector<8x128xf32>
    %135 = arith.addf %133, %134 : vector<8x128xf32>
    %136 = arith.mulf %135, %12 : vector<8x128xf32>
    %137 = math.tanh %136 : vector<8x128xf32>
    %138 = arith.mulf %137, %12 : vector<8x128xf32>
    %139 = arith.addf %138, %15 : vector<8x128xf32>
    %140 = vector.extract_strided_slice %139 {offsets = [0, 0], sizes = [8, 32], strides = [1, 1]} : vector<8x128xf32> to vector<8x32xf32>
    %141 = vector.extract_strided_slice %139 {offsets = [0, 32], sizes = [8, 32], strides = [1, 1]} : vector<8x128xf32> to vector<8x32xf32>
    %142 = vector.extract_strided_slice %139 {offsets = [0, 64], sizes = [8, 32], strides = [1, 1]} : vector<8x128xf32> to vector<8x32xf32>
    %143 = vector.extract_strided_slice %139 {offsets = [0, 96], sizes = [8, 32], strides = [1, 1]} : vector<8x128xf32> to vector<8x32xf32>
    %144 = arith.mulf %141, %124 : vector<8x32xf32>
    %145 = arith.mulf %140, %142 : vector<8x32xf32>
    %146 = arith.addf %144, %145 : vector<8x32xf32>
    %147 = math.tanh %146 : vector<8x32xf32>
    %148 = arith.mulf %143, %147 : vector<8x32xf32>
    %149 = arith.truncf %148 : vector<8x32xf32> to vector<8x32xbf16>
    %150 = vector.extract_strided_slice %3 {offsets = [0, 6], sizes = [8, 1], strides = [1, 1]} : vector<8x12xf32> to vector<8x1xf32>
    %151 = vector.broadcast %150 : vector<8x1xf32> to vector<8x128xf32>
    %152 = vector.broadcast %0 : vector<1x128xf32> to vector<8x128xf32>
    %153 = arith.mulf %151, %152 : vector<8x128xf32>
    %154 = vector.broadcast %2 : vector<1x128xf32> to vector<8x128xf32>
    %155 = arith.addf %153, %154 : vector<8x128xf32>
    %cst_18 = arith.constant dense<0.000000e+00> : vector<8x128xf32>
    %156 = tpu.matmul %149, %1, %cst_18 {dimension_numbers = #tpu.dot_dimension_numbers<[1], [0], [0], [1], [0, 0, 1, 1], [], []>} : vector<8x32xbf16>, vector<32x128xbf16>, vector<8x128xf32> -> vector<8x128xf32>
    %157 = arith.addf %155, %156 : vector<8x128xf32>
    %158 = arith.mulf %157, %12 : vector<8x128xf32>
    %159 = math.tanh %158 : vector<8x128xf32>
    %160 = arith.mulf %159, %12 : vector<8x128xf32>
    %161 = arith.addf %160, %15 : vector<8x128xf32>
    %162 = vector.extract_strided_slice %161 {offsets = [0, 0], sizes = [8, 32], strides = [1, 1]} : vector<8x128xf32> to vector<8x32xf32>
    %163 = vector.extract_strided_slice %161 {offsets = [0, 32], sizes = [8, 32], strides = [1, 1]} : vector<8x128xf32> to vector<8x32xf32>
    %164 = vector.extract_strided_slice %161 {offsets = [0, 64], sizes = [8, 32], strides = [1, 1]} : vector<8x128xf32> to vector<8x32xf32>
    %165 = vector.extract_strided_slice %161 {offsets = [0, 96], sizes = [8, 32], strides = [1, 1]} : vector<8x128xf32> to vector<8x32xf32>
    %166 = arith.mulf %163, %146 : vector<8x32xf32>
    %167 = arith.mulf %162, %164 : vector<8x32xf32>
    %168 = arith.addf %166, %167 : vector<8x32xf32>
    %169 = math.tanh %168 : vector<8x32xf32>
    %170 = arith.mulf %165, %169 : vector<8x32xf32>
    %171 = arith.truncf %170 : vector<8x32xf32> to vector<8x32xbf16>
    %172 = vector.extract_strided_slice %3 {offsets = [0, 7], sizes = [8, 1], strides = [1, 1]} : vector<8x12xf32> to vector<8x1xf32>
    %173 = vector.broadcast %172 : vector<8x1xf32> to vector<8x128xf32>
    %174 = vector.broadcast %0 : vector<1x128xf32> to vector<8x128xf32>
    %175 = arith.mulf %173, %174 : vector<8x128xf32>
    %176 = vector.broadcast %2 : vector<1x128xf32> to vector<8x128xf32>
    %177 = arith.addf %175, %176 : vector<8x128xf32>
    %cst_19 = arith.constant dense<0.000000e+00> : vector<8x128xf32>
    %178 = tpu.matmul %171, %1, %cst_19 {dimension_numbers = #tpu.dot_dimension_numbers<[1], [0], [0], [1], [0, 0, 1, 1], [], []>} : vector<8x32xbf16>, vector<32x128xbf16>, vector<8x128xf32> -> vector<8x128xf32>
    %179 = arith.addf %177, %178 : vector<8x128xf32>
    %180 = arith.mulf %179, %12 : vector<8x128xf32>
    %181 = math.tanh %180 : vector<8x128xf32>
    %182 = arith.mulf %181, %12 : vector<8x128xf32>
    %183 = arith.addf %182, %15 : vector<8x128xf32>
    %184 = vector.extract_strided_slice %183 {offsets = [0, 0], sizes = [8, 32], strides = [1, 1]} : vector<8x128xf32> to vector<8x32xf32>
    %185 = vector.extract_strided_slice %183 {offsets = [0, 32], sizes = [8, 32], strides = [1, 1]} : vector<8x128xf32> to vector<8x32xf32>
    %186 = vector.extract_strided_slice %183 {offsets = [0, 64], sizes = [8, 32], strides = [1, 1]} : vector<8x128xf32> to vector<8x32xf32>
    %187 = vector.extract_strided_slice %183 {offsets = [0, 96], sizes = [8, 32], strides = [1, 1]} : vector<8x128xf32> to vector<8x32xf32>
    %188 = arith.mulf %185, %168 : vector<8x32xf32>
    %189 = arith.mulf %184, %186 : vector<8x32xf32>
    %190 = arith.addf %188, %189 : vector<8x32xf32>
    %191 = math.tanh %190 : vector<8x32xf32>
    %192 = arith.mulf %187, %191 : vector<8x32xf32>
    %193 = arith.truncf %192 : vector<8x32xf32> to vector<8x32xbf16>
    %194 = vector.extract_strided_slice %3 {offsets = [0, 8], sizes = [8, 1], strides = [1, 1]} : vector<8x12xf32> to vector<8x1xf32>
    %195 = vector.broadcast %194 : vector<8x1xf32> to vector<8x128xf32>
    %196 = vector.broadcast %0 : vector<1x128xf32> to vector<8x128xf32>
    %197 = arith.mulf %195, %196 : vector<8x128xf32>
    %198 = vector.broadcast %2 : vector<1x128xf32> to vector<8x128xf32>
    %199 = arith.addf %197, %198 : vector<8x128xf32>
    %cst_20 = arith.constant dense<0.000000e+00> : vector<8x128xf32>
    %200 = tpu.matmul %193, %1, %cst_20 {dimension_numbers = #tpu.dot_dimension_numbers<[1], [0], [0], [1], [0, 0, 1, 1], [], []>} : vector<8x32xbf16>, vector<32x128xbf16>, vector<8x128xf32> -> vector<8x128xf32>
    %201 = arith.addf %199, %200 : vector<8x128xf32>
    %202 = arith.mulf %201, %12 : vector<8x128xf32>
    %203 = math.tanh %202 : vector<8x128xf32>
    %204 = arith.mulf %203, %12 : vector<8x128xf32>
    %205 = arith.addf %204, %15 : vector<8x128xf32>
    %206 = vector.extract_strided_slice %205 {offsets = [0, 0], sizes = [8, 32], strides = [1, 1]} : vector<8x128xf32> to vector<8x32xf32>
    %207 = vector.extract_strided_slice %205 {offsets = [0, 32], sizes = [8, 32], strides = [1, 1]} : vector<8x128xf32> to vector<8x32xf32>
    %208 = vector.extract_strided_slice %205 {offsets = [0, 64], sizes = [8, 32], strides = [1, 1]} : vector<8x128xf32> to vector<8x32xf32>
    %209 = vector.extract_strided_slice %205 {offsets = [0, 96], sizes = [8, 32], strides = [1, 1]} : vector<8x128xf32> to vector<8x32xf32>
    %210 = arith.mulf %207, %190 : vector<8x32xf32>
    %211 = arith.mulf %206, %208 : vector<8x32xf32>
    %212 = arith.addf %210, %211 : vector<8x32xf32>
    %213 = math.tanh %212 : vector<8x32xf32>
    %214 = arith.mulf %209, %213 : vector<8x32xf32>
    %215 = arith.truncf %214 : vector<8x32xf32> to vector<8x32xbf16>
    %216 = vector.extract_strided_slice %3 {offsets = [0, 9], sizes = [8, 1], strides = [1, 1]} : vector<8x12xf32> to vector<8x1xf32>
    %217 = vector.broadcast %216 : vector<8x1xf32> to vector<8x128xf32>
    %218 = vector.broadcast %0 : vector<1x128xf32> to vector<8x128xf32>
    %219 = arith.mulf %217, %218 : vector<8x128xf32>
    %220 = vector.broadcast %2 : vector<1x128xf32> to vector<8x128xf32>
    %221 = arith.addf %219, %220 : vector<8x128xf32>
    %cst_21 = arith.constant dense<0.000000e+00> : vector<8x128xf32>
    %222 = tpu.matmul %215, %1, %cst_21 {dimension_numbers = #tpu.dot_dimension_numbers<[1], [0], [0], [1], [0, 0, 1, 1], [], []>} : vector<8x32xbf16>, vector<32x128xbf16>, vector<8x128xf32> -> vector<8x128xf32>
    %223 = arith.addf %221, %222 : vector<8x128xf32>
    %224 = arith.mulf %223, %12 : vector<8x128xf32>
    %225 = math.tanh %224 : vector<8x128xf32>
    %226 = arith.mulf %225, %12 : vector<8x128xf32>
    %227 = arith.addf %226, %15 : vector<8x128xf32>
    %228 = vector.extract_strided_slice %227 {offsets = [0, 0], sizes = [8, 32], strides = [1, 1]} : vector<8x128xf32> to vector<8x32xf32>
    %229 = vector.extract_strided_slice %227 {offsets = [0, 32], sizes = [8, 32], strides = [1, 1]} : vector<8x128xf32> to vector<8x32xf32>
    %230 = vector.extract_strided_slice %227 {offsets = [0, 64], sizes = [8, 32], strides = [1, 1]} : vector<8x128xf32> to vector<8x32xf32>
    %231 = vector.extract_strided_slice %227 {offsets = [0, 96], sizes = [8, 32], strides = [1, 1]} : vector<8x128xf32> to vector<8x32xf32>
    %232 = arith.mulf %229, %212 : vector<8x32xf32>
    %233 = arith.mulf %228, %230 : vector<8x32xf32>
    %234 = arith.addf %232, %233 : vector<8x32xf32>
    %235 = math.tanh %234 : vector<8x32xf32>
    %236 = arith.mulf %231, %235 : vector<8x32xf32>
    %237 = arith.truncf %236 : vector<8x32xf32> to vector<8x32xbf16>
    %238 = vector.extract_strided_slice %3 {offsets = [0, 10], sizes = [8, 1], strides = [1, 1]} : vector<8x12xf32> to vector<8x1xf32>
    %239 = vector.broadcast %238 : vector<8x1xf32> to vector<8x128xf32>
    %240 = vector.broadcast %0 : vector<1x128xf32> to vector<8x128xf32>
    %241 = arith.mulf %239, %240 : vector<8x128xf32>
    %242 = vector.broadcast %2 : vector<1x128xf32> to vector<8x128xf32>
    %243 = arith.addf %241, %242 : vector<8x128xf32>
    %cst_22 = arith.constant dense<0.000000e+00> : vector<8x128xf32>
    %244 = tpu.matmul %237, %1, %cst_22 {dimension_numbers = #tpu.dot_dimension_numbers<[1], [0], [0], [1], [0, 0, 1, 1], [], []>} : vector<8x32xbf16>, vector<32x128xbf16>, vector<8x128xf32> -> vector<8x128xf32>
    %245 = arith.addf %243, %244 : vector<8x128xf32>
    %246 = arith.mulf %245, %12 : vector<8x128xf32>
    %247 = math.tanh %246 : vector<8x128xf32>
    %248 = arith.mulf %247, %12 : vector<8x128xf32>
    %249 = arith.addf %248, %15 : vector<8x128xf32>
    %250 = vector.extract_strided_slice %249 {offsets = [0, 0], sizes = [8, 32], strides = [1, 1]} : vector<8x128xf32> to vector<8x32xf32>
    %251 = vector.extract_strided_slice %249 {offsets = [0, 32], sizes = [8, 32], strides = [1, 1]} : vector<8x128xf32> to vector<8x32xf32>
    %252 = vector.extract_strided_slice %249 {offsets = [0, 64], sizes = [8, 32], strides = [1, 1]} : vector<8x128xf32> to vector<8x32xf32>
    %253 = vector.extract_strided_slice %249 {offsets = [0, 96], sizes = [8, 32], strides = [1, 1]} : vector<8x128xf32> to vector<8x32xf32>
    %254 = arith.mulf %251, %234 : vector<8x32xf32>
    %255 = arith.mulf %250, %252 : vector<8x32xf32>
    %256 = arith.addf %254, %255 : vector<8x32xf32>
    %257 = math.tanh %256 : vector<8x32xf32>
    %258 = arith.mulf %253, %257 : vector<8x32xf32>
    %259 = arith.truncf %258 : vector<8x32xf32> to vector<8x32xbf16>
    %260 = vector.extract_strided_slice %3 {offsets = [0, 11], sizes = [8, 1], strides = [1, 1]} : vector<8x12xf32> to vector<8x1xf32>
    %261 = vector.broadcast %260 : vector<8x1xf32> to vector<8x128xf32>
    %262 = vector.broadcast %0 : vector<1x128xf32> to vector<8x128xf32>
    %263 = arith.mulf %261, %262 : vector<8x128xf32>
    %264 = vector.broadcast %2 : vector<1x128xf32> to vector<8x128xf32>
    %265 = arith.addf %263, %264 : vector<8x128xf32>
    %cst_23 = arith.constant dense<0.000000e+00> : vector<8x128xf32>
    %266 = tpu.matmul %259, %1, %cst_23 {dimension_numbers = #tpu.dot_dimension_numbers<[1], [0], [0], [1], [0, 0, 1, 1], [], []>} : vector<8x32xbf16>, vector<32x128xbf16>, vector<8x128xf32> -> vector<8x128xf32>
    %267 = arith.addf %265, %266 : vector<8x128xf32>
    %268 = arith.mulf %267, %12 : vector<8x128xf32>
    %269 = math.tanh %268 : vector<8x128xf32>
    %270 = arith.mulf %269, %12 : vector<8x128xf32>
    %271 = arith.addf %270, %15 : vector<8x128xf32>
    %272 = vector.extract_strided_slice %271 {offsets = [0, 0], sizes = [8, 32], strides = [1, 1]} : vector<8x128xf32> to vector<8x32xf32>
    %273 = vector.extract_strided_slice %271 {offsets = [0, 32], sizes = [8, 32], strides = [1, 1]} : vector<8x128xf32> to vector<8x32xf32>
    %274 = vector.extract_strided_slice %271 {offsets = [0, 64], sizes = [8, 32], strides = [1, 1]} : vector<8x128xf32> to vector<8x32xf32>
    %275 = vector.extract_strided_slice %271 {offsets = [0, 96], sizes = [8, 32], strides = [1, 1]} : vector<8x128xf32> to vector<8x32xf32>
    %276 = arith.mulf %273, %256 : vector<8x32xf32>
    %277 = arith.mulf %272, %274 : vector<8x32xf32>
    %278 = arith.addf %276, %277 : vector<8x32xf32>
    %279 = math.tanh %278 : vector<8x32xf32>
    %280 = arith.mulf %275, %279 : vector<8x32xf32>
    %281 = arith.truncf %280 : vector<8x32xf32> to vector<8x32xbf16>
    %c0_24 = arith.constant 0 : index
    %c0_25 = arith.constant 0 : index
    %282 = vector.load %arg5[%c0_24, %c0_25] : memref<32x16xbf16, #tpu.memory_space<vmem>>, vector<32x16xbf16>
    %cst_26 = arith.constant dense<0.000000e+00> : vector<8x16xf32>
    %283 = tpu.matmul %281, %282, %cst_26 {dimension_numbers = #tpu.dot_dimension_numbers<[1], [0], [0], [1], [0, 0, 1, 1], [], []>} : vector<8x32xbf16>, vector<32x16xbf16>, vector<8x16xf32> -> vector<8x16xf32>
    %c0_27 = arith.constant 0 : index
    %c0_28 = arith.constant 0 : index
    %284 = vector.load %arg6[%c0_27, %c0_28] : memref<1x16xf32, #tpu.memory_space<vmem>>, vector<1x16xf32>
    %285 = vector.broadcast %284 : vector<1x16xf32> to vector<8x16xf32>
    %286 = arith.addf %283, %285 : vector<8x16xf32>
    %cst_29 = arith.constant dense<0.000000e+00> : vector<8xf32>
    %287 = vector.multi_reduction <add>, %286, %cst_29 [1] : vector<8x16xf32> to vector<8xf32>
    %288 = vector.shape_cast %287 : vector<8xf32> to vector<8x1xf32>
    %cst_30 = arith.constant 1.600000e+01 : f32
    %289 = vector.broadcast %cst_30 : f32 to vector<8x1xf32>
    %290 = arith.divf %288, %289 : vector<8x1xf32>
    %291 = vector.broadcast %290 : vector<8x1xf32> to vector<8x16xf32>
    %292 = arith.subf %286, %291 : vector<8x16xf32>
    %293 = arith.mulf %292, %292 : vector<8x16xf32>
    %cst_31 = arith.constant dense<0.000000e+00> : vector<8xf32>
    %294 = vector.multi_reduction <add>, %293, %cst_31 [1] : vector<8x16xf32> to vector<8xf32>
    %295 = vector.shape_cast %294 : vector<8xf32> to vector<8x1xf32>
    %cst_32 = arith.constant 1.600000e+01 : f32
    %296 = vector.broadcast %cst_32 : f32 to vector<8x1xf32>
    %297 = arith.divf %295, %296 : vector<8x1xf32>
    %298 = vector.broadcast %290 : vector<8x1xf32> to vector<8x16xf32>
    %299 = arith.subf %286, %298 : vector<8x16xf32>
    %cst_33 = arith.constant 9.99999974E-6 : f32
    %300 = vector.broadcast %cst_33 : f32 to vector<8x1xf32>
    %301 = arith.addf %297, %300 : vector<8x1xf32>
    %302 = math.rsqrt %301 : vector<8x1xf32>
    %303 = vector.broadcast %302 : vector<8x1xf32> to vector<8x16xf32>
    %304 = arith.mulf %299, %303 : vector<8x16xf32>
    %305 = math.tanh %304 : vector<8x16xf32>
    %c0_34 = arith.constant 0 : index
    %c0_35 = arith.constant 0 : index
    %306 = vector.load %arg7[%c0_34, %c0_35] : memref<8x16xf32, #tpu.memory_space<vmem>>, vector<8x16xf32>
    tpu.vector_store %arg7[%c0_34, %c0_35], %305 {strides = array<i32>} : memref<8x16xf32, #tpu.memory_space<vmem>>, vector<8x16xf32>,
    return
  }
  func.func @transform_0(%arg0: i32) -> (i32, i32) {
    %c0_i32 = arith.constant 0 : i32
    %c0_i32_0 = arith.constant 0 : i32
    return %arg0, %c0_i32 : i32, i32
  }
  func.func @transform_1(%arg0: i32) -> (i32, i32) {
    %c0_i32 = arith.constant 0 : i32
    %c0_i32_0 = arith.constant 0 : i32
    %c0_i32_1 = arith.constant 0 : i32
    return %c0_i32, %c0_i32_0 : i32, i32
  }
  func.func @transform_2(%arg0: i32) -> (i32, i32) {
    %c0_i32 = arith.constant 0 : i32
    %c0_i32_0 = arith.constant 0 : i32
    %c0_i32_1 = arith.constant 0 : i32
    return %c0_i32, %c0_i32_0 : i32, i32
  }
  func.func @transform_3(%arg0: i32) -> (i32, i32) {
    %c0_i32 = arith.constant 0 : i32
    %c0_i32_0 = arith.constant 0 : i32
    %c0_i32_1 = arith.constant 0 : i32
    return %c0_i32, %c0_i32_0 : i32, i32
  }
  func.func @transform_4(%arg0: i32) -> (i32, i32) {
    %c0_i32 = arith.constant 0 : i32
    %c0_i32_0 = arith.constant 0 : i32
    %c0_i32_1 = arith.constant 0 : i32
    return %c0_i32, %c0_i32_0 : i32, i32
  }
  func.func @transform_5(%arg0: i32) -> (i32, i32) {
    %c0_i32 = arith.constant 0 : i32
    %c0_i32_0 = arith.constant 0 : i32
    %c0_i32_1 = arith.constant 0 : i32
    return %c0_i32, %c0_i32_0 : i32, i32
  }
  func.func @transform_6(%arg0: i32) -> (i32, i32) {
    %c0_i32 = arith.constant 0 : i32
    %c0_i32_0 = arith.constant 0 : i32
    return %arg0, %c0_i32 : i32, i32
  }
}

</mosaic_0001>

<bundles_post_ra>
// kernel: tpu_custom_call.1
= control target key start
LH: loop header
LB: loop body
LE: loop exit
PB: predicated region body
PF: predicated region fallthrough
CT: control target
= control target key end

     0   :  { %v863_v2 = vmov 0   ;;  %s1115_s0 = inlined_call_operand.vmem [shape: f32[8,12], index: 0, kind: input, shape index: {}]   ;;  %s1116_s1 = inlined_call_operand.vmem [shape: f32[1,128], index: 1, kind: input, shape index: {}]   ;;  %s1117_s2 = inlined_call_operand.vmem [shape: bf16[32,128], index: 2, kind: input, shape index: {}]   ;;  %s1118_s3 = inlined_call_operand.vmem [shape: f32[1,128], index: 3, kind: input, shape index: {}]   ;;  %s1119_s4 = inlined_call_operand.vmem [shape: bf16[32,16], index: 4, kind: input, shape index: {}]   ;;  %s1120_s5 = inlined_call_operand.vmem [shape: f32[1,16], index: 5, kind: input, shape index: {}]   ;;  %s1121_s6 = inlined_call_operand.hbm [shape: f32[8,16], index: 6, kind: output, shape index: {}]  }
   0x1   :  { %v918_v0 = vld [vmem:[%s1117_s2 + $0x8] sm:$0xff]  ;;  %v923_v1 = vld [vmem:[%s1115_s0] sm:$0xff]  ;;  %768 = vset.pattern.permute.xlu0 %v863_v2 }
   0x2   :  { %74 = vmatpush.bf16.msra.mxu0 %v918_v0  ;;  %v929_v3 = vld [vmem:[%s1117_s2] sm:$0xff]  ;;  %41 = vperm.xlu0 %768, %v923_v1  }
   0x3   :  { %11 = vsyncpa [#allocation3], 0  ;;  %122 = vmatpush.bf16.msra.mxu1 %v918_v0  ;;  %170 = vmatpush.bf16.msra.mxu2 %v918_v0  ;;  %v32_v4 = vlaneseq  ;;  %v952_v5 = vld [vmem:[%s1116_s1] ss:$0 sm:$0xff]  ;;  %v864_v11 = vmov 0.5   ;;  %s865_s1 = smov 64  }
   0x4   :  { %218 = vmatpush.bf16.msra.mxu3 %v918_v0  ;;  %v958_v9 = vld [vmem:[%s1118_s3] ss:$0 sm:$0xff]  ;;  %s866_s3 = smov 32   ;;  %v867_v30 = vmov 1   ;;  %vm64_vm3 = vcmask 261120   ;;  %v868_v51 = vmov 2  }
   0x5   :  { %v33_v7 = vand.u32 127, %v32_v4  ;;  %769 = vset.pattern.permute.xlu2 %v867_v30  ;;  %770 = vset.pattern.permute.xlu1 %v868_v51  ;;  %vm671_vm4 = vcmask 130048   ;;  %s710_s13 = sshll.u32 %s1121_s6, 4  ;;  %s711_s13 = int_to_ptr.hbm [resolvable:$true] %s710_s13 }
   0x6   :  { %75 = vmatpush.bf16.msra.mxu0 %v929_v3 }
   0x7   :  { %123 = vmatpush.bf16.msra.mxu1 %v929_v3  ;;  %171 = vmatpush.bf16.msra.mxu2 %v929_v3  ;;  %vm34_vm0 = vcmp.ge.s32.totalorder %v33_v7, 64  ;;  %vm35_vm1 = vcmp.lt.s32.totalorder %v33_v7, 96 }
   0x8   :  { %219 = vmatpush.bf16.msra.mxu3 %v929_v3  ;;  %vm36_vm2 = vmand %vm34_vm0, %vm35_vm1 }
   0x9   :  { %76 = vmatmul.bf16.vlgmr.msra.gmra.mxu0 %v863_v2  ;;  %v961_v12 = vsel %vm36_vm2, 1.0, %v864_v11  ;;  %v964_v18 = vsel %vm36_vm2, 0.0, %v864_v11 }
   0xa   :  { %266 = vmatpush.bf16.msrb.mxu0 %v918_v0 }
   0xb   :  { %314 = vmatpush.bf16.msrb.mxu1 %v918_v0  ;;  %362 = vmatpush.bf16.msrb.mxu2 %v918_v0 }
   0xc   :  { %410 = vmatpush.bf16.msrb.mxu3 %v918_v0 }
   0xe   :  { %267 = vmatpush.bf16.msrb.mxu0 %v929_v3 }
   0xf   :  { %315 = vmatpush.bf16.msrb.mxu1 %v929_v3  ;;  %363 = vmatpush.bf16.msrb.mxu2 %v929_v3 }
  0x10   :  { %411 = vmatpush.bf16.msrb.mxu3 %v929_v3 }
  0x12   :  { %458 = vmatpush.bf16.msra.mxu0 %v918_v0 }
  0x16   :  { %459 = vmatpush.bf16.msra.mxu0 %v929_v3 }
  0x74   :  { %v42_v6 = vpop.permute.xlu0 %41 }
  0x75   :  { %v47_v8 = vmul.f32 %v952_v5, %v42_v6 }
  0x77   :  { %v51_v10 = vadd.f32 %v958_v9, %v47_v8 }
  0x86   :  { %v77_v13 = vpop.f32.mrf.mxu0 }
  0x87   :  { %v81_v14 = vadd.f32 %v77_v13, %v51_v10 }
  0x89   :  { %v82_v15 = vmul.f32 %v81_v14, %v961_v12  ;;  %v869_v14 = vmov 3  }
  0x8a   :  { %771 = vset.pattern.permute.xlu0 %v869_v14 }
  0x8b   :  { %783 = vtanh.f32 %v82_v15 }
  0x8e   :  { %v79_v16 = vpop.f32.mrf.mxu0 }
  0x91   :  { %v784_v17 = vpop.eup %783 }
  0x92   :  { %v84_v19 = vmul.f32 %v784_v17, %v961_v12 }
  0x94   :  { %v85_v20 = vadd.f32 %v84_v19, %v964_v18 }
  0x96   :  { %88 = vrot.lane.b32.xlu0 %v85_v20, %s865_s1  ;;  %v86_v23 = vmul.f32 0.0, %v85_v20 }
 0x108   :  { %v89_v21 = vpop.permute.xlu0 %88 }
 0x109   :  { %v91_v22 = vmul.f32 %v89_v21, %v85_v20 }
 0x10b   :  { %93 = vrot.lane.b32.xlu1 %v91_v22, %s866_s3 }
 0x17d   :  { %v94_v24 = vpop.permute.xlu1 %93 }
 0x17e   :  { %v96_v25 = vadd.f32 %v94_v24, %v86_v23 }
 0x180   :  { %785 = vtanh.f32 %v96_v25 }
 0x186   :  { %v786_v26 = vpop.eup %785 }
 0x187   :  { %99 = vrot.lane.b32.xlu1 %v786_v26, %s865_s1 }
 0x1f9   :  { %v100_v27 = vpop.permute.xlu1 %99 }
 0x1fa   :  { %v102_v28 = vmul.f32 %v100_v27, %v85_v20 }
 0x1fc   :  { %v103_v29 = vpack.c.bf16 %v102_v28, %v102_v28 }
 0x1fe   :  { %111 = vrot.lane.b32.xlu2 %v103_v29, %s866_s3 }
 0x206   :  { %105 = vperm.xlu2 %769, %v923_v1  }
 0x258   :  { %v112_v31 = vpop.permute.xlu2 %111 }
 0x259   :  { %727 = vmatmul.msk.bf16.vlgmr.msra.gmra.mxu1 %vm64_vm3, %v112_v31 }
 0x25a   :  { %506 = vmatpush.bf16.msra.mxu1 %v918_v0 }
 0x25e   :  { %507 = vmatpush.bf16.msra.mxu1 %v929_v3 }
 0x260   :  { %v106_v32 = vpop.permute.xlu2 %105 }
 0x261   :  { %v108_v33 = vmul.f32 %v952_v5, %v106_v32 }
 0x263   :  { %v109_v34 = vadd.f32 %v958_v9, %v108_v33 }
 0x2d6   :  { %v125_v35 = vpop.f32.mrf.mxu1 }
 0x2d7   :  { %v129_v36 = vadd.f32 %v125_v35, %v109_v34  ;;  %v870_v34 = vmov 4  }
 0x2d9   :  { %v130_v37 = vmul.f32 %v129_v36, %v961_v12 }
 0x2db   :  { %787 = vtanh.f32 %v130_v37 }
 0x2de   :  { %v127_v38 = vpop.f32.mrf.mxu1 }
 0x2e1   :  { %v788_v39 = vpop.eup %787 }
 0x2e2   :  { %v132_v40 = vmul.f32 %v788_v39, %v961_v12 }
 0x2e4   :  { %v133_v41 = vadd.f32 %v132_v40, %v964_v18 }
 0x2e6   :  { %136 = vrot.lane.b32.xlu0 %v133_v41, %s865_s1  ;;  %v134_v44 = vmul.f32 %v133_v41, %v96_v25 }
 0x358   :  { %v137_v42 = vpop.permute.xlu0 %136 }
 0x359   :  { %v139_v43 = vmul.f32 %v137_v42, %v133_v41 }
 0x35b   :  { %141 = vrot.lane.b32.xlu1 %v139_v43, %s866_s3 }
 0x363   :  { %153 = vperm.xlu1 %770, %v923_v1  }
 0x3cd   :  { %v142_v45 = vpop.permute.xlu1 %141 }
 0x3ce   :  { %v144_v46 = vadd.f32 %v142_v45, %v134_v44 }
 0x3d0   :  { %789 = vtanh.f32 %v144_v46 }
 0x3d5   :  { %v154_v53 = vpop.permute.xlu1 %153 }
 0x3d6   :  { %v790_v47 = vpop.eup %789  ;;  %v156_v54 = vmul.f32 %v952_v5, %v154_v53 }
 0x3d7   :  { %147 = vrot.lane.b32.xlu2 %v790_v47, %s865_s1 }
 0x3d8   :  { %v157_v55 = vadd.f32 %v958_v9, %v156_v54 }
 0x431   :  { %v148_v48 = vpop.permute.xlu2 %147 }
 0x432   :  { %v150_v49 = vmul.f32 %v148_v48, %v133_v41 }
 0x434   :  { %v151_v50 = vpack.c.bf16 %v150_v49, %v150_v49 }
 0x436   :  { %159 = vrot.lane.b32.xlu0 %v151_v50, %s866_s3 }
 0x4a8   :  { %v160_v52 = vpop.permute.xlu0 %159 }
 0x4a9   :  { %728 = vmatmul.msk.bf16.vlgmr.msra.gmra.mxu2 %vm64_vm3, %v160_v52 }
 0x4aa   :  { %554 = vmatpush.bf16.msra.mxu2 %v918_v0 }
 0x4ae   :  { %555 = vmatpush.bf16.msra.mxu2 %v929_v3 }
 0x52c   :  { %v173_v56 = vpop.f32.mrf.mxu2 }
 0x52d   :  { %v177_v57 = vadd.f32 %v173_v56, %v157_v55  ;;  %v871_v55 = vmov 5  }
 0x52f   :  { %v178_v58 = vmul.f32 %v177_v57, %v961_v12 }
 0x531   :  { %791 = vtanh.f32 %v178_v58 }
 0x534   :  { %v175_v59 = vpop.f32.mrf.mxu2 }
 0x537   :  { %v792_v60 = vpop.eup %791 }
 0x538   :  { %v180_v61 = vmul.f32 %v792_v60, %v961_v12 }
 0x53a   :  { %v181_v62 = vadd.f32 %v180_v61, %v964_v18 }
 0x53c   :  { %184 = vrot.lane.b32.xlu2 %v181_v62, %s865_s1  ;;  %v182_v4 = vmul.f32 %v181_v62, %v144_v46 }
 0x596   :  { %v185_v63 = vpop.permute.xlu2 %184 }
 0x597   :  { %v187_v2 = vmul.f32 %v185_v63, %v181_v62 }
 0x599   :  { %189 = vrot.lane.b32.xlu0 %v187_v2, %s866_s3 }
 0x5a1   :  { %201 = vperm.xlu0 %771, %v923_v1  }
 0x5a9   :  { %772 = vset.pattern.permute.xlu0 %v870_v34 }
 0x5aa   :  { %249 = vperm.xlu0 %772, %v923_v1  }
 0x5b2   :  { %773 = vset.pattern.permute.xlu0 %v871_v55 }
 0x5b3   :  { %297 = vperm.xlu0 %773, %v923_v1  }
 0x60b   :  { %v190_v6 = vpop.permute.xlu0 %189 }
 0x60c   :  { %v192_v7 = vadd.f32 %v190_v6, %v182_v4 }
 0x60e   :  { %793 = vtanh.f32 %v192_v7 }
 0x613   :  { %v202_v16 = vpop.permute.xlu0 %201 }
 0x614   :  { %v794_v8 = vpop.eup %793  ;;  %v204_v17 = vmul.f32 %v952_v5, %v202_v16 }
 0x615   :  { %195 = vrot.lane.b32.xlu1 %v794_v8, %s865_s1 }
 0x616   :  { %v205_v19 = vadd.f32 %v958_v9, %v204_v17 }
 0x61c   :  { %v250_v36 = vpop.permute.xlu0 %249 }
 0x61d   :  { %v252_v37 = vmul.f32 %v952_v5, %v250_v36 }
 0x61f   :  { %v253_v38 = vadd.f32 %v958_v9, %v252_v37 }
 0x625   :  { %v298_v57 = vpop.permute.xlu0 %297 }
 0x626   :  { %v300_v58 = vmul.f32 %v952_v5, %v298_v57 }
 0x628   :  { %v301_v59 = vadd.f32 %v958_v9, %v300_v58 }
 0x687   :  { %v196_v10 = vpop.permute.xlu1 %195 }
 0x688   :  { %v198_v11 = vmul.f32 %v196_v10, %v181_v62 }
 0x68a   :  { %v199_v13 = vpack.c.bf16 %v198_v11, %v198_v11 }
 0x68c   :  { %207 = vrot.lane.b32.xlu2 %v199_v13, %s866_s3 }
 0x6e6   :  { %v208_v15 = vpop.permute.xlu2 %207 }
 0x6e7   :  { %729 = vmatmul.msk.bf16.vlgmr.msra.gmra.mxu3 %vm64_vm3, %v208_v15 }
 0x6e8   :  { %602 = vmatpush.bf16.msra.mxu3 %v918_v0 }
 0x6ec   :  { %603 = vmatpush.bf16.msra.mxu3 %v929_v3 }
 0x76a   :  { %v221_v20 = vpop.f32.mrf.mxu3 }
 0x76b   :  { %v225_v21 = vadd.f32 %v221_v20, %v205_v19  ;;  %v872_v19 = vmov 6  }
 0x76c   :  { %774 = vset.pattern.permute.xlu0 %v872_v19 }
 0x76d   :  { %v226_v22 = vmul.f32 %v225_v21, %v961_v12  ;;  %345 = vperm.xlu0 %774, %v923_v1  }
 0x76f   :  { %795 = vtanh.f32 %v226_v22 }
 0x772   :  { %v223_v23 = vpop.f32.mrf.mxu3 }
 0x775   :  { %v796_v24 = vpop.eup %795 }
 0x776   :  { %v228_v25 = vmul.f32 %v796_v24, %v961_v12 }
 0x778   :  { %v229_v26 = vadd.f32 %v228_v25, %v964_v18 }
 0x77a   :  { %232 = vrot.lane.b32.xlu1 %v229_v26, %s865_s1  ;;  %v230_v27 = vmul.f32 %v229_v26, %v192_v7 }
 0x7df   :  { %v346_v21 = vpop.permute.xlu0 %345 }
 0x7e0   :  { %v348_v22 = vmul.f32 %v952_v5, %v346_v21 }
 0x7e2   :  { %v349_v23 = vadd.f32 %v958_v9, %v348_v22 }
 0x7ec   :  { %v233_v0 = vpop.permute.xlu1 %232 }
 0x7ed   :  { %v235_v3 = vmul.f32 %v233_v0, %v229_v26 }
 0x7ef   :  { %237 = vrot.lane.b32.xlu2 %v235_v3, %s866_s3 }
 0x849   :  { %v238_v28 = vpop.permute.xlu2 %237 }
 0x84a   :  { %v240_v29 = vadd.f32 %v238_v28, %v230_v27 }
 0x84c   :  { %797 = vtanh.f32 %v240_v29 }
 0x852   :  { %v798_v30 = vpop.eup %797 }
 0x853   :  { %243 = vrot.lane.b32.xlu1 %v798_v30, %s865_s1 }
 0x8c5   :  { %v244_v31 = vpop.permute.xlu1 %243 }
 0x8c6   :  { %v246_v32 = vmul.f32 %v244_v31, %v229_v26 }
 0x8c8   :  { %v247_v33 = vpack.c.bf16 %v246_v32, %v246_v32 }
 0x8ca   :  { %255 = vrot.lane.b32.xlu2 %v247_v33, %s866_s3 }
 0x924   :  { %v256_v35 = vpop.permute.xlu2 %255 }
 0x925   :  { %730 = vmatmul.msk.bf16.vlgmr.msrb.gmra.mxu0 %vm64_vm3, %v256_v35 }
 0x9a2   :  { %v269_v39 = vpop.f32.mrf.mxu0 }
 0x9a3   :  { %v273_v40 = vadd.f32 %v269_v39, %v253_v38  ;;  %v873_v38 = vmov 7  }
 0x9a4   :  { %775 = vset.pattern.permute.xlu0 %v873_v38 }
 0x9a5   :  { %v274_v41 = vmul.f32 %v273_v40, %v961_v12  ;;  %393 = vperm.xlu0 %775, %v923_v1  }
 0x9a7   :  { %799 = vtanh.f32 %v274_v41 }
 0x9aa   :  { %v271_v42 = vpop.f32.mrf.mxu0 }
 0x9ad   :  { %v800_v43 = vpop.eup %799 }
 0x9ae   :  { %v276_v44 = vmul.f32 %v800_v43, %v961_v12 }
 0x9b0   :  { %v277_v45 = vadd.f32 %v276_v44, %v964_v18 }
 0x9b2   :  { %280 = vrot.lane.b32.xlu1 %v277_v45, %s865_s1  ;;  %v278_v48 = vmul.f32 %v277_v45, %v240_v29 }
 0xa17   :  { %v394_v40 = vpop.permute.xlu0 %393 }
 0xa18   :  { %v396_v41 = vmul.f32 %v952_v5, %v394_v40 }
 0xa1a   :  { %v397_v42 = vadd.f32 %v958_v9, %v396_v41 }
 0xa24   :  { %v281_v46 = vpop.permute.xlu1 %280 }
 0xa25   :  { %v283_v47 = vmul.f32 %v281_v46, %v277_v45 }
 0xa27   :  { %285 = vrot.lane.b32.xlu2 %v283_v47, %s866_s3 }
 0xa81   :  { %v286_v49 = vpop.permute.xlu2 %285 }
 0xa82   :  { %v288_v50 = vadd.f32 %v286_v49, %v278_v48 }
 0xa84   :  { %801 = vtanh.f32 %v288_v50 }
 0xa8a   :  { %v802_v51 = vpop.eup %801 }
 0xa8b   :  { %291 = vrot.lane.b32.xlu1 %v802_v51, %s865_s1 }
 0xafd   :  { %v292_v52 = vpop.permute.xlu1 %291 }
 0xafe   :  { %v294_v53 = vmul.f32 %v292_v52, %v277_v45 }
 0xb00   :  { %v295_v54 = vpack.c.bf16 %v294_v53, %v294_v53 }
 0xb02   :  { %303 = vrot.lane.b32.xlu2 %v295_v54, %s866_s3 }
 0xb5c   :  { %v304_v56 = vpop.permute.xlu2 %303 }
 0xb5d   :  { %731 = vmatmul.msk.bf16.vlgmr.msrb.gmra.mxu1 %vm64_vm3, %v304_v56 }
 0xbda   :  { %v317_v60 = vpop.f32.mrf.mxu1 }
 0xbdb   :  { %v321_v61 = vadd.f32 %v317_v60, %v301_v59  ;;  %v874_v59 = vmov 8  }
 0xbdc   :  { %776 = vset.pattern.permute.xlu0 %v874_v59 }
 0xbdd   :  { %v322_v62 = vmul.f32 %v321_v61, %v961_v12  ;;  %441 = vperm.xlu0 %776, %v923_v1  }
 0xbdf   :  { %803 = vtanh.f32 %v322_v62 }
 0xbe2   :  { %v319_v63 = vpop.f32.mrf.mxu1 }
 0xbe5   :  { %v804_v2 = vpop.eup %803 }
 0xbe6   :  { %v324_v4 = vmul.f32 %v804_v2, %v961_v12 }
 0xbe8   :  { %v325_v6 = vadd.f32 %v324_v4, %v964_v18 }
 0xbea   :  { %328 = vrot.lane.b32.xlu1 %v325_v6, %s865_s1  ;;  %v326_v10 = vmul.f32 %v325_v6, %v288_v50 }
 0xc4f   :  { %v442_v61 = vpop.permute.xlu0 %441 }
 0xc50   :  { %v444_v62 = vmul.f32 %v952_v5, %v442_v61 }
 0xc52   :  { %v445_v63 = vadd.f32 %v958_v9, %v444_v62 }
 0xc5c   :  { %v329_v7 = vpop.permute.xlu1 %328 }
 0xc5d   :  { %v331_v8 = vmul.f32 %v329_v7, %v325_v6 }
 0xc5f   :  { %333 = vrot.lane.b32.xlu2 %v331_v8, %s866_s3 }
 0xcb9   :  { %v334_v11 = vpop.permute.xlu2 %333 }
 0xcba   :  { %v336_v13 = vadd.f32 %v334_v11, %v326_v10 }
 0xcbc   :  { %805 = vtanh.f32 %v336_v13 }
 0xcc2   :  { %v806_v14 = vpop.eup %805 }
 0xcc3   :  { %339 = vrot.lane.b32.xlu1 %v806_v14, %s865_s1 }
 0xd35   :  { %v340_v15 = vpop.permute.xlu1 %339 }
 0xd36   :  { %v342_v16 = vmul.f32 %v340_v15, %v325_v6 }
 0xd38   :  { %v343_v17 = vpack.c.bf16 %v342_v16, %v342_v16 }
 0xd3a   :  { %351 = vrot.lane.b32.xlu2 %v343_v17, %s866_s3 }
 0xd94   :  { %v352_v20 = vpop.permute.xlu2 %351 }
 0xd95   :  { %732 = vmatmul.msk.bf16.vlgmr.msrb.gmra.mxu2 %vm64_vm3, %v352_v20 }
 0xe18   :  { %v365_v24 = vpop.f32.mrf.mxu2 }
 0xe19   :  { %v369_v25 = vadd.f32 %v365_v24, %v349_v23  ;;  %v875_v23 = vmov 9  }
 0xe1a   :  { %777 = vset.pattern.permute.xlu0 %v875_v23 }
 0xe1b   :  { %v370_v26 = vmul.f32 %v369_v25, %v961_v12  ;;  %489 = vperm.xlu0 %777, %v923_v1  }
 0xe1d   :  { %807 = vtanh.f32 %v370_v26 }
 0xe20   :  { %v367_v0 = vpop.f32.mrf.mxu2 }
 0xe23   :  { %v808_v3 = vpop.eup %807 }
 0xe24   :  { %v372_v27 = vmul.f32 %v808_v3, %v961_v12 }
 0xe26   :  { %v373_v28 = vadd.f32 %v372_v27, %v964_v18 }
 0xe28   :  { %376 = vrot.lane.b32.xlu1 %v373_v28, %s865_s1  ;;  %v374_v31 = vmul.f32 %v373_v28, %v336_v13 }
 0xe8d   :  { %v490_v25 = vpop.permute.xlu0 %489 }
 0xe8e   :  { %v492_v26 = vmul.f32 %v952_v5, %v490_v25  ;;  %v782_v25 = vld [vmem:[%s1120_s5] ss:$0 sm:$0xff] }
 0xe90   :  { %v493_v0 = vadd.f32 %v958_v9, %v492_v26 }
 0xe9a   :  { %v377_v29 = vpop.permute.xlu1 %376 }
 0xe9b   :  { %v379_v30 = vmul.f32 %v377_v29, %v373_v28 }
 0xe9d   :  { %381 = vrot.lane.b32.xlu2 %v379_v30, %s866_s3 }
 0xef7   :  { %v382_v32 = vpop.permute.xlu2 %381 }
 0xef8   :  { %v384_v33 = vadd.f32 %v382_v32, %v374_v31 }
 0xefa   :  { %809 = vtanh.f32 %v384_v33 }
 0xf00   :  { %v810_v34 = vpop.eup %809 }
 0xf01   :  { %387 = vrot.lane.b32.xlu1 %v810_v34, %s865_s1 }
 0xf73   :  { %v388_v35 = vpop.permute.xlu1 %387 }
 0xf74   :  { %v390_v36 = vmul.f32 %v388_v35, %v373_v28 }
 0xf76   :  { %v391_v37 = vpack.c.bf16 %v390_v36, %v390_v36 }
 0xf78   :  { %399 = vrot.lane.b32.xlu2 %v391_v37, %s866_s3 }
 0xfd2   :  { %v400_v39 = vpop.permute.xlu2 %399 }
 0xfd3   :  { %733 = vmatmul.msk.bf16.vlgmr.msrb.gmra.mxu3 %vm64_vm3, %v400_v39 }
0x1056   :  { %v413_v43 = vpop.f32.mrf.mxu3 }
0x1057   :  { %v417_v44 = vadd.f32 %v413_v43, %v397_v42  ;;  %v876_v42 = vmov 10  }
0x1058   :  { %778 = vset.pattern.permute.xlu0 %v876_v42 }
0x1059   :  { %v418_v45 = vmul.f32 %v417_v44, %v961_v12  ;;  %537 = vperm.xlu0 %778, %v923_v1  }
0x105b   :  { %811 = vtanh.f32 %v418_v45 }
0x105e   :  { %v415_v46 = vpop.f32.mrf.mxu3 }
0x1061   :  { %v812_v47 = vpop.eup %811 }
0x1062   :  { %v420_v48 = vmul.f32 %v812_v47, %v961_v12 }
0x1064   :  { %v421_v49 = vadd.f32 %v420_v48, %v964_v18 }
0x1066   :  { %424 = vrot.lane.b32.xlu1 %v421_v49, %s865_s1  ;;  %v422_v52 = vmul.f32 %v421_v49, %v384_v33 }
0x10cb   :  { %v538_v44 = vpop.permute.xlu0 %537 }
0x10cc   :  { %v540_v45 = vmul.f32 %v952_v5, %v538_v44 }
0x10ce   :  { %v541_v46 = vadd.f32 %v958_v9, %v540_v45 }
0x10d8   :  { %v425_v50 = vpop.permute.xlu1 %424 }
0x10d9   :  { %v427_v51 = vmul.f32 %v425_v50, %v421_v49 }
0x10db   :  { %429 = vrot.lane.b32.xlu2 %v427_v51, %s866_s3 }
0x1135   :  { %v430_v53 = vpop.permute.xlu2 %429 }
0x1136   :  { %v432_v54 = vadd.f32 %v430_v53, %v422_v52 }
0x1138   :  { %813 = vtanh.f32 %v432_v54 }
0x113e   :  { %v814_v55 = vpop.eup %813 }
0x113f   :  { %435 = vrot.lane.b32.xlu1 %v814_v55, %s865_s1 }
0x11b1   :  { %v436_v56 = vpop.permute.xlu1 %435 }
0x11b2   :  { %v438_v57 = vmul.f32 %v436_v56, %v421_v49 }
0x11b4   :  { %v439_v58 = vpack.c.bf16 %v438_v57, %v438_v57 }
0x11b6   :  { %447 = vrot.lane.b32.xlu2 %v439_v58, %s866_s3 }
0x1210   :  { %v448_v60 = vpop.permute.xlu2 %447 }
0x1211   :  { %734 = vmatmul.msk.bf16.vlgmr.msra.gmra.mxu0 %vm64_vm3, %v448_v60 }
0x128e   :  { %v461_v2 = vpop.f32.mrf.mxu0 }
0x128f   :  { %v465_v4 = vadd.f32 %v461_v2, %v445_v63  ;;  %v877_v63 = vmov 11  }
0x1290   :  { %779 = vset.pattern.permute.xlu0 %v877_v63 }
0x1291   :  { %v466_v6 = vmul.f32 %v465_v4, %v961_v12  ;;  %585 = vperm.xlu0 %779, %v923_v1  }
0x1293   :  { %815 = vtanh.f32 %v466_v6 }
0x1296   :  { %v463_v7 = vpop.f32.mrf.mxu0 }
0x1299   :  { %v816_v8 = vpop.eup %815 }
0x129a   :  { %v468_v10 = vmul.f32 %v816_v8, %v961_v12 }
0x129c   :  { %v469_v11 = vadd.f32 %v468_v10, %v964_v18 }
0x129e   :  { %472 = vrot.lane.b32.xlu1 %v469_v11, %s865_s1  ;;  %v470_v15 = vmul.f32 %v469_v11, %v432_v54 }
0x1303   :  { %v586_v4 = vpop.permute.xlu0 %585 }
0x1304   :  { %v588_v6 = vmul.f32 %v952_v5, %v586_v4 }
0x1306   :  { %v589_v7 = vadd.f32 %v958_v9, %v588_v6 }
0x1310   :  { %v473_v13 = vpop.permute.xlu1 %472 }
0x1311   :  { %v475_v14 = vmul.f32 %v473_v13, %v469_v11 }
0x1313   :  { %477 = vrot.lane.b32.xlu2 %v475_v14, %s866_s3 }
0x136d   :  { %v478_v16 = vpop.permute.xlu2 %477 }
0x136e   :  { %v480_v17 = vadd.f32 %v478_v16, %v470_v15 }
0x1370   :  { %817 = vtanh.f32 %v480_v17 }
0x1376   :  { %v818_v19 = vpop.eup %817 }
0x1377   :  { %483 = vrot.lane.b32.xlu1 %v818_v19, %s865_s1 }
0x13e9   :  { %v484_v20 = vpop.permute.xlu1 %483 }
0x13ea   :  { %v486_v21 = vmul.f32 %v484_v20, %v469_v11 }
0x13ec   :  { %v487_v22 = vpack.c.bf16 %v486_v21, %v486_v21  ;;  %v750_v21 = vld [vmem:[%s1119_s4 + $0x8] sm:$0xff] }
0x13ed   :  { %664 = vmatpush.bf16.msrb.mxu0 %v750_v21 }
0x13ee   :  { %495 = vrot.lane.b32.xlu2 %v487_v22, %s866_s3 }
0x1448   :  { %v496_v24 = vpop.permute.xlu2 %495 }
0x1449   :  { %735 = vmatmul.msk.bf16.vlgmr.msra.gmra.mxu1 %vm64_vm3, %v496_v24 }
0x14c6   :  { %v509_v3 = vpop.f32.mrf.mxu1 }
0x14c7   :  { %v513_v27 = vadd.f32 %v509_v3, %v493_v0 }
0x14c9   :  { %v514_v28 = vmul.f32 %v513_v27, %v961_v12 }
0x14cb   :  { %819 = vtanh.f32 %v514_v28  ;;  %v878_v28 = vmov 16.0  }
0x14ce   :  { %v511_v29 = vpop.f32.mrf.mxu1 }
0x14d1   :  { %v820_v30 = vpop.eup %819 }
0x14d2   :  { %v516_v31 = vmul.f32 %v820_v30, %v961_v12 }
0x14d4   :  { %v517_v32 = vadd.f32 %v516_v31, %v964_v18 }
0x14d6   :  { %520 = vrot.lane.b32.xlu1 %v517_v32, %s865_s1  ;;  %v518_v35 = vmul.f32 %v517_v32, %v480_v17 }
0x1548   :  { %v521_v33 = vpop.permute.xlu1 %520 }
0x1549   :  { %v523_v34 = vmul.f32 %v521_v33, %v517_v32 }
0x154b   :  { %525 = vrot.lane.b32.xlu2 %v523_v34, %s866_s3 }
0x15a5   :  { %v526_v36 = vpop.permute.xlu2 %525 }
0x15a6   :  { %v528_v37 = vadd.f32 %v526_v36, %v518_v35 }
0x15a8   :  { %821 = vtanh.f32 %v528_v37 }
0x15ae   :  { %v822_v38 = vpop.eup %821 }
0x15af   :  { %531 = vrot.lane.b32.xlu1 %v822_v38, %s865_s1 }
0x1621   :  { %v532_v39 = vpop.permute.xlu1 %531 }
0x1622   :  { %v534_v40 = vmul.f32 %v532_v39, %v517_v32 }
0x1624   :  { %v535_v41 = vpack.c.bf16 %v534_v40, %v534_v40 }
0x1626   :  { %543 = vrot.lane.b32.xlu2 %v535_v41, %s866_s3 }
0x1680   :  { %v544_v43 = vpop.permute.xlu2 %543 }
0x1681   :  { %736 = vmatmul.msk.bf16.vlgmr.msra.gmra.mxu2 %vm64_vm3, %v544_v43 }
0x1704   :  { %v557_v47 = vpop.f32.mrf.mxu2 }
0x1705   :  { %v561_v48 = vadd.f32 %v557_v47, %v541_v46 }
0x1707   :  { %v562_v49 = vmul.f32 %v561_v48, %v961_v12 }
0x1709   :  { %823 = vtanh.f32 %v562_v49 }
0x170c   :  { %v559_v50 = vpop.f32.mrf.mxu2 }
0x170f   :  { %v824_v51 = vpop.eup %823 }
0x1710   :  { %v564_v52 = vmul.f32 %v824_v51, %v961_v12 }
0x1712   :  { %v565_v53 = vadd.f32 %v564_v52, %v964_v18 }
0x1714   :  { %568 = vrot.lane.b32.xlu1 %v565_v53, %s865_s1  ;;  %v566_v56 = vmul.f32 %v565_v53, %v528_v37 }
0x1786   :  { %v569_v54 = vpop.permute.xlu1 %568 }
0x1787   :  { %v571_v55 = vmul.f32 %v569_v54, %v565_v53 }
0x1789   :  { %573 = vrot.lane.b32.xlu2 %v571_v55, %s866_s3 }
0x17e3   :  { %v574_v57 = vpop.permute.xlu2 %573 }
0x17e4   :  { %v576_v58 = vadd.f32 %v574_v57, %v566_v56 }
0x17e6   :  { %825 = vtanh.f32 %v576_v58 }
0x17ec   :  { %v826_v59 = vpop.eup %825 }
0x17ed   :  { %579 = vrot.lane.b32.xlu1 %v826_v59, %s865_s1 }
0x185f   :  { %v580_v60 = vpop.permute.xlu1 %579 }
0x1860   :  { %v582_v61 = vmul.f32 %v580_v60, %v565_v53 }
0x1862   :  { %v583_v62 = vpack.c.bf16 %v582_v61, %v582_v61 }
0x1864   :  { %591 = vrot.lane.b32.xlu2 %v583_v62, %s866_s3 }
0x18be   :  { %v592_v2 = vpop.permute.xlu2 %591 }
0x18bf   :  { %737 = vmatmul.msk.bf16.vlgmr.msra.gmra.mxu3 %vm64_vm3, %v592_v2 }
0x1942   :  { %v605_v8 = vpop.f32.mrf.mxu3 }
0x1943   :  { %v609_v10 = vadd.f32 %v605_v8, %v589_v7 }
0x1945   :  { %v610_v11 = vmul.f32 %v609_v10, %v961_v12 }
0x1947   :  { %827 = vtanh.f32 %v610_v11 }
0x194a   :  { %v607_v13 = vpop.f32.mrf.mxu3 }
0x194d   :  { %v828_v14 = vpop.eup %827 }
0x194e   :  { %v612_v15 = vmul.f32 %v828_v14, %v961_v12  ;;  %v749_v12 = vld [vmem:[%s1119_s4] sm:$0xff]  ;;  %s879_s4 = smov [#allocation2]  }
0x194f   :  { %665 = vmatpush.bf16.msrb.mxu0 %v749_v12  ;;  %s708_s5 = sshll.u32 %s879_s4, 4  ;;  %s709_s5 = int_to_ptr.vmem [resolvable:$true] %s708_s5 }
0x1950   :  { %v613_v16 = vadd.f32 %v612_v15, %v964_v18 }
0x1952   :  { %616 = vrot.lane.b32.xlu1 %v613_v16, %s865_s1  ;;  %v614_v5 = vmul.f32 %v613_v16, %v576_v58 }
0x19c4   :  { %v617_v1 = vpop.permute.xlu1 %616 }
0x19c5   :  { %v619_v17 = vmul.f32 %v617_v1, %v613_v16 }
0x19c7   :  { %621 = vrot.lane.b32.xlu2 %v619_v17, %s866_s3 }
0x1a21   :  { %v622_v19 = vpop.permute.xlu2 %621 }
0x1a22   :  { %v624_v9 = vadd.f32 %v622_v19, %v614_v5 }
0x1a24   :  { %829 = vtanh.f32 %v624_v9 }
0x1a25   :  { %831 = vrcp.f32 %v878_v28 }
0x1a2a   :  { %v830_v20 = vpop.eup %829 }
0x1a2b   :  { %627 = vrot.lane.b32.xlu1 %v830_v20, %s865_s1  ;;  %v832_v29 = vpop.eup %831 }
0x1a2c   :  { %v676_v30 = vmul.f32 16.0, %v832_v29  ;;  %vm680_vm5 = vweird.f32 %v832_v29 }
0x1a2e   :  { %v677_v31 = vsub.f32 1.0, %v676_v30 }
0x1a30   :  { %v678_v32 = vmul.f32 %v832_v29, %v677_v31 }
0x1a32   :  { %v679_v33 = vadd.f32 %v832_v29, %v678_v32 }
0x1a34   :  { %v681_v34 = vsel %vm680_vm5, %v832_v29, %v679_v33 }
0x1a9d   :  { %v628_v18 = vpop.permute.xlu1 %627 }
0x1a9e   :  { %v630_v22 = vmul.f32 %v628_v18, %v613_v16 }
0x1aa0   :  { %v631_v23 = vpack.c.bf16 %v630_v22, %v630_v22 }
0x1aa2   :  { %641 = vrot.lane.b32.xlu2 %v631_v23, %s866_s3 }
0x1afc   :  { %v642_v24 = vpop.permute.xlu2 %641 }
0x1afd   :  { %746 = vmatmul.msk.bf16.vlgmr.msrb.gmra.mxu0 %vm64_vm3, %v642_v24 }
0x1b7a   :  { %v667_v26 = vpop.f32.mrf.mxu0 }
0x1b7b   :  { %v668_v0 = vadd.f32 %v782_v25, %v667_v26 }
0x1b7d   :  { %v672_v3 = vsel %vm671_vm4, %v668_v0, 0.0 }
0x1b7e   :  { %673 = vadd.xlane.f32.xlu0 %v672_v3 }
0x1b82   :  { %v669_v27 = vpop.f32.mrf.mxu0 }
0x1bf1   :  { %v674_v35 = vpop.xlane.xlu0 %673 }
0x1bf2   :  { %v682_v36 = vmul.f32 %v681_v34, %v674_v35 }
0x1bf4   :  { %v683_v37 = vsub.f32 %v668_v0, %v682_v36 }
0x1bf6   :  { %v684_v38 = vmul.f32 %v683_v37, %v683_v37 }
0x1bf8   :  { %v685_v39 = vsel %vm671_vm4, %v684_v38, 0.0 }
0x1bf9   :  { %686 = vadd.xlane.f32.xlu1 %v685_v39 }
0x1c6c   :  { %v687_v40 = vpop.xlane.xlu1 %686 }
0x1c6d   :  { %v688_v41 = vmul.f32 %v687_v40, %v681_v34 }
0x1c6f   :  { %v689_v42 = vadd.f32 1e-05, %v688_v41 }
0x1c71   :  { %833 = vrsqrt.f32 %v689_v42  ;;  %vm696_vm7 = vweird.f32 %v689_v42 }
0x1c77   :  { %v834_v43 = vpop.eup %833 }
0x1c78   :  { %v691_v44 = vmul.f32 %v834_v43, %v689_v42  ;;  %vm697_vm6 = vweird.f32 %v834_v43 }
0x1c79   :  { %vm698_vm8 = vmor %vm696_vm7, %vm697_vm6 }
0x1c7a   :  { %v692_v45 = vmul.f32 %v834_v43, %v691_v44 }
0x1c7c   :  { %v693_v46 = vmul.f32 0.5, %v692_v45 }
0x1c7e   :  { %v694_v47 = vsub.f32 1.5, %v693_v46 }
0x1c80   :  { %v695_v48 = vmul.f32 %v834_v43, %v694_v47 }
0x1c82   :  { %v699_v49 = vsel %vm698_vm8, %v834_v43, %v695_v48 }
0x1c83   :  { %v700_v50 = vmul.f32 %v699_v49, %v683_v37 }
0x1c85   :  { %835 = vtanh.f32 %v700_v50 }
0x1c8b   :  { %v836_v51 = vpop.eup %835 }
0x1c8c   :  { %702 = vst.msk [vmem:[#allocation2] sm:$0xff] %vm671_vm4, %v836_v51 }
0x1c8d   :  { %713 = dma.vmem_to_hbm [thread:$0]  %s709_s5, 128, %s711_s13, [#allocation3]  }
0x1c8e   :  { %861 = dma.done.wait [#allocation3], 128  }
0x1c8f   :  { %862 = vsyncadd [#allocation3], 4294967168 }
0x1c90   :  { %718 = vsyncpa [#allocation3], 1 }

</bundles_post_ra>
